<compile_context>
chip_gen: v5e
topology: v5e:2x2
jax: 0.10.0
libtpu: 0.0.40
codegen_flags: <defaults>
</compile_context>

<pallas_src>
from functools import partial

import jax
import jax.numpy as jnp
from jax.experimental import pallas as pl
from jax.experimental.pallas import tpu as pltpu


_MIB = 1024 * 1024


def _tpu_config():
    """Per-generation sizing. Returns (vmem_limit_bytes, fused_budget_bytes,
    two_tensorcores)."""
    vmem_cap = None
    try:
        info = pltpu.get_tpu_info()
        vmem_cap = int(getattr(info, "vmem_capacity_bytes", 0)) or None
    except Exception:
        vmem_cap = None
    if vmem_cap is not None and vmem_cap >= 96 * _MIB:
        # v5e / v6e: 128 MiB physical VMEM, single TensorCore per chip.
        return 96 * _MIB, 56 * _MIB, False
    # v7x (64 MiB VMEM per TC, 2 TCs) or unknown: stay conservative.
    return 48 * _MIB, 36 * _MIB, True


# ---------------------------------------------------------------------------
# Fused one-pass kernel (small/medium images): mean -> MLP (VPU) -> sigmoid
# -> scale.  All pooling / MLP math in f32 regardless of input dtype.
# ---------------------------------------------------------------------------
def _fused_kernel(x_ref, w1t_ref, b1_ref, w2_ref, b2_ref, o_ref, *, inv_hw):
    x = x_ref[0]                                                     # (C, HW)

    # Global average pool over spatial axis, f32 accumulation -> (C, 1).
    mean = jnp.sum(x.astype(jnp.float32), axis=-1, keepdims=True) * inv_hw

    # Layer 1 on the VPU: h[r] = sum_c w1[r, c] * mean[c] + b1[r]
    h = jnp.sum(w1t_ref[...] * mean, axis=0, keepdims=True) + b1_ref[...]   # (1, R)
    h = jnp.maximum(h, 0.0)

    # Layer 2 on the VPU: y[c] = sum_r w2[c, r] * h[r] + b2[c]
    y = jnp.sum(w2_ref[...] * h, axis=-1, keepdims=True) + b2_ref[...]      # (C, 1)
    y = jax.nn.sigmoid(y)

    # Channel-wise rescale, broadcast over spatial.
    o_ref[0] = x * y.astype(o_ref.dtype)


def _ca_fused(x, w1t, b1r, w2, b2c, *, vmem_limit):
    N, C, HW = x.shape
    R = w1t.shape[1]
    return pl.pallas_call(
        partial(_fused_kernel, inv_hw=1.0 / HW),
        out_shape=jax.ShapeDtypeStruct((N, C, HW), x.dtype),
        grid_spec=pltpu.PrefetchScalarGridSpec(
            num_scalar_prefetch=0,
            grid=(N,),
            in_specs=[
                pl.BlockSpec((1, C, HW), lambda b: (b, 0, 0)),   # x, one image/step
                pl.BlockSpec((C, R), lambda b: (0, 0)),          # w1^T (resident)
                pl.BlockSpec((1, R), lambda b: (0, 0)),          # b1 row
                pl.BlockSpec((C, R), lambda b: (0, 0)),          # w2
                pl.BlockSpec((C, 1), lambda b: (0, 0)),          # b2 col
            ],
            out_specs=pl.BlockSpec((1, C, HW), lambda b: (b, 0, 0)),
        ),
        compiler_params=pltpu.CompilerParams(
            dimension_semantics=("parallel",),
            vmem_limit_bytes=vmem_limit,
        ),
    )(x, w1t, b1r, w2, b2c)


# ---------------------------------------------------------------------------
# Split (tiled) path for large images
# ---------------------------------------------------------------------------
def _reduce_kernel(x_ref, part_ref, *, t_hw, hw_total, n_hw_p, n_hw, ragged):
    p = pl.program_id(1)
    j = pl.program_id(2)

    @pl.when(j == 0)
    def _():
        part_ref[...] = jnp.zeros_like(part_ref)

    xb = x_ref[0]                                                    # (C, T)

    def _accum(vals):
        part_ref[0, 0] += jnp.sum(vals.astype(jnp.float32), axis=-1, keepdims=True)

    if not ragged:
        _accum(xb)
    else:
        # Valid lane count for this hw block.  <= 0 for "phantom" blocks that
        # only exist because the hw axis was padded for the 2-way core split
        # (their DMA index is clamped; the mask zeroes their contribution).
        valid = hw_total - (p * n_hw_p + j) * t_hw

        @pl.when(valid >= t_hw)                                      # full block
        def _():
            _accum(xb)

        @pl.when(valid < t_hw)                                       # ragged / phantom
        def _():
            lane = jax.lax.broadcasted_iota(jnp.int32, xb.shape, 1)
            _accum(jnp.where(lane < valid, xb, jnp.zeros_like(xb)))


def _scale_kernel(x_ref, part_ref, w1t_ref, b1_ref, w2_ref, b2_ref, o_ref, *, inv_hw):
    # Recompute the tiny squeeze-excite MLP from the resident partial sums on
    # every step: O(C * C/8) VPU work, hidden under the x-tile DMA.  This
    # removes the separate XLA MLP dispatch and its HBM round-trips.
    mean = jnp.sum(part_ref[0], axis=0) * inv_hw                     # (C, 1) f32
    h = jnp.sum(w1t_ref[...] * mean, axis=0, keepdims=True) + b1_ref[...]   # (1, R)
    h = jnp.maximum(h, 0.0)
    y = jnp.sum(w2_ref[...] * h, axis=-1, keepdims=True) + b2_ref[...]      # (C, 1)
    y = jax.nn.sigmoid(y)
    o_ref[0] = x_ref[0] * y.astype(o_ref.dtype)


def _pick_tile_hw(C, HW, itemsize, vmem_limit):
    # ~8 MiB per (C, T) block (dtype-aware), capped so the scale stage's
    # double-buffered in + out blocks stay well under the vmem limit.
    blk_bytes = min(8 * _MIB, max(vmem_limit // 6, _MIB))
    t = (blk_bytes // (max(C, 1) * itemsize)) // 128 * 128
    t = max(int(t), 128)
    return min(t, ((HW + 127) // 128) * 128)


def _ca_split(x, w1t, b1r, w2, b2c, *, vmem_limit, tile_hw=None):
    N, C, HW = x.shape
    R = w1t.shape[1]
    itemsize = jnp.dtype(x.dtype).itemsize

    if tile_hw is None:
        T = _pick_tile_hw(C, HW, itemsize, vmem_limit)
    else:
        T = max(128, ((int(tile_hw) + 127) // 128) * 128)
        T = min(T, ((HW + 127) // 128) * 128)
    n_hw = pl.cdiv(HW, T)

    # 2-way split of the hw reduce so v7x's two TensorCores both reduce;
    # harmless on single-TC chips.  Phantom blocks (when n_hw is odd) are
    # clamped in the index map and masked to zero in the kernel.
    P = 2 if n_hw >= 2 else 1
    n_hw_p = pl.cdiv(n_hw, P)
    ragged = (HW % T != 0) or (P * n_hw_p != n_hw)

    def x_red_map(n, p, j):
        blk = p * n_hw_p + j
        return (n, 0, jnp.minimum(blk, n_hw - 1))

    # Stage 1: tiled core-parallel partial-sum reduce -> (N, P, C, 1) f32.
    partial_sums = pl.pallas_call(
        partial(_reduce_kernel, t_hw=T, hw_total=HW, n_hw_p=n_hw_p,
                n_hw=n_hw, ragged=ragged),
        out_shape=jax.ShapeDtypeStruct((N, P, C, 1), jnp.float32),
        grid_spec=pltpu.PrefetchScalarGridSpec(
            num_scalar_prefetch=0,
            grid=(N, P, n_hw_p),
            in_specs=[pl.BlockSpec((1, C, T), x_red_map)],
            out_specs=pl.BlockSpec((1, 1, C, 1), lambda n, p, j: (n, p, 0, 0)),
        ),
        compiler_params=pltpu.CompilerParams(
            dimension_semantics=("parallel", "parallel", "arbitrary"),
            vmem_limit_bytes=vmem_limit,
        ),
    )(x)

    # Stage 2: tiled channel-wise rescale; MLP folded into the kernel.
    return pl.pallas_call(
        partial(_scale_kernel, inv_hw=1.0 / HW),
        out_shape=jax.ShapeDtypeStruct((N, C, HW), x.dtype),
        grid_spec=pltpu.PrefetchScalarGridSpec(
            num_scalar_prefetch=0,
            grid=(N, n_hw),
            in_specs=[
                pl.BlockSpec((1, C, T), lambda n, j: (n, 0, j)),
                pl.BlockSpec((1, P, C, 1), lambda n, j: (n, 0, 0, 0)),
                pl.BlockSpec((C, R), lambda n, j: (0, 0)),
                pl.BlockSpec((1, R), lambda n, j: (0, 0)),
                pl.BlockSpec((C, R), lambda n, j: (0, 0)),
                pl.BlockSpec((C, 1), lambda n, j: (0, 0)),
            ],
            out_specs=pl.BlockSpec((1, C, T), lambda n, j: (n, 0, j)),
        ),
        compiler_params=pltpu.CompilerParams(
            dimension_semantics=("parallel", "parallel"),
            vmem_limit_bytes=vmem_limit,
        ),
    )(x, partial_sums, w1t, b1r, w2, b2c)


# ---------------------------------------------------------------------------
# Public wrapper
# ---------------------------------------------------------------------------
def ca_layer(x_nchw, w1, b1, w2, b2, *, force_split=False, tile_hw=None):
    """x_nchw: (N, C, H, W); w1: (C//8, C); b1: (C//8,); w2: (C, C//8);
    b2: (C,). Returns (N, C, H, W)."""
    N, C, H, W = x_nchw.shape
    R = w1.shape[0]
    HW = H * W
    x = x_nchw.reshape(N, C, HW)

    # Tiny MLP params in f32, lane-friendly layouts.
    w1t = jnp.asarray(w1, jnp.float32).T             # (C, R)
    b1r = jnp.asarray(b1, jnp.float32).reshape(1, R)
    w2f = jnp.asarray(w2, jnp.float32)               # (C, R)
    b2c = jnp.asarray(b2, jnp.float32).reshape(C, 1)

    vmem_limit, fused_budget, two_core = _tpu_config()

    itemsize = jnp.dtype(x.dtype).itemsize
    img_bytes = C * HW * itemsize
    # Double-buffered in + out blocks, plus an f32 temp for the pooled sum
    # when the input dtype is narrower than f32.
    fused_bytes = 4 * img_bytes + (C * HW * 4 if itemsize < 4 else 0)

    use_fused = (not force_split) and fused_bytes <= fused_budget
    if two_core and N == 1 and img_bytes >= 4 * _MIB:
        # v7x: the fused grid=(N,) pins a single image to one TensorCore; the
        # split path core-parallelizes both the reduce and the scale.
        use_fused = False

    if use_fused:
        out = _ca_fused(x, w1t, b1r, w2f, b2c, vmem_limit=vmem_limit)
    else:
        out = _ca_split(x, w1t, b1r, w2f, b2c,
                        vmem_limit=vmem_limit, tile_hw=tile_hw)
    return out.reshape(N, C, H, W)


def ca_layer_ref(x, w1, b1, w2, b2):
    """Pure-JAX reference matching the PyTorch forward."""
    y = jnp.mean(x, axis=(2, 3), keepdims=True)                        # (N,C,1,1)
    y = jnp.einsum("rc,nchw->nrhw", w1, y) + b1[None, :, None, None]   # (N,R,1,1)
    y = jnp.maximum(y, 0.0)
    y = jnp.einsum("cr,nrhw->nchw", w2, y) + b2[None, :, None, None]   # (N,C,1,1)
    y = jax.nn.sigmoid(y)
    return x * y


if __name__ == "__main__":
    key = jax.random.PRNGKey(0)
    kx, k1, k2, k3, k4, kx2, kx3 = jax.random.split(key, 7)

    # Channel must be >= 8 (channel // 8 hidden units).
    N, C = 2, 16
    R = C // 8
    # Conv2d(C, C//8, 1) weight (R, C, 1, 1) -> (R, C); bias (R,)
    w1 = jax.random.normal(k1, (R, C), dtype=jnp.float32) * 0.1
    b1 = jax.random.normal(k2, (R,), dtype=jnp.float32) * 0.1
    # Conv2d(C//8, C, 1) weight (C, R, 1, 1) -> (C, R); bias (C,)
    w2 = jax.random.normal(k3, (C, R), dtype=jnp.float32) * 0.1
    b2 = jax.random.normal(k4, (C,), dtype=jnp.float32) * 0.1

    # Test 1: fused one-pass path (small image).
    x1 = jax.random.normal(kx, (N, C, 16, 16), dtype=jnp.float32)
    out1 = jax.block_until_ready(ca_layer(x1, w1, b1, w2, b2))
    ref1 = ca_layer_ref(x1, w1, b1, w2, b2)
    assert out1.shape == x1.shape
    assert jnp.allclose(out1, ref1, atol=1e-5, rtol=1e-5), "fused path mismatch"

    # Test 2: split/tiled path, even HW tiling (core-parallel reduce, P=2).
    out2 = jax.block_until_ready(
        ca_layer(x1, w1, b1, w2, b2, force_split=True, tile_hw=128))
    assert jnp.allclose(out2, ref1, atol=1e-5, rtol=1e-5), "split path mismatch"

    # Test 3: split/tiled path with ragged last hw block + odd block count
    # (exercises the masked ragged tail AND the masked phantom block).
    x3 = jax.random.normal(kx2, (N, C, 12, 25), dtype=jnp.float32)   # HW=300
    out3 = jax.block_until_ready(
        ca_layer(x3, w1, b1, w2, b2, force_split=True, tile_hw=128))
    ref3 = ca_layer_ref(x3, w1, b1, w2, b2)
    assert jnp.allclose(out3, ref3, atol=1e-5, rtol=1e-5), "ragged split mismatch"

    # Test 4: fused path with HW not a multiple of 128 (full-array block).
    x4 = jax.random.normal(kx3, (N, C, 15, 15), dtype=jnp.float32)   # HW=225
    out4 = jax.block_until_ready(ca_layer(x4, w1, b1, w2, b2))
    ref4 = ca_layer_ref(x4, w1, b1, w2, b2)
    assert jnp.allclose(out4, ref4, atol=1e-5, rtol=1e-5), "fused ragged mismatch"

    print("KERNEL_OK")
</pallas_src>

<mosaic_0001>
module attributes {stable_mosaic.version = 11 : i64} {
  func.func @_fused_kernel(%arg0: i32, %arg1: memref<1x16x256xf32, #tpu.memory_space<vmem>>, %arg2: memref<16x2xf32, #tpu.memory_space<vmem>>, %arg3: memref<1x2xf32, #tpu.memory_space<vmem>>, %arg4: memref<16x2xf32, #tpu.memory_space<vmem>>, %arg5: memref<16x1xf32, #tpu.memory_space<vmem>>, %arg6: memref<1x16x256xf32, #tpu.memory_space<vmem>>) attributes {dimension_semantics = [#tpu.dimension_semantics<parallel>], iteration_bounds = array<i64: 2>, scalar_prefetch = 0 : i64, scratch_operands = 0 : i64, tpu.core_type = #tpu.core_type<tc>, window_params = [{transform_indices = @transform_0, window_bounds = array<i64: 1, 16, 256>}, {pipeline_mode = #tpu.pipeline_mode<synchronous>, transform_indices = @transform_1, window_bounds = array<i64: 16, 2>}, {pipeline_mode = #tpu.pipeline_mode<synchronous>, transform_indices = @transform_2, window_bounds = array<i64: 1, 2>}, {pipeline_mode = #tpu.pipeline_mode<synchronous>, transform_indices = @transform_3, window_bounds = array<i64: 16, 2>}, {pipeline_mode = #tpu.pipeline_mode<synchronous>, transform_indices = @transform_4, window_bounds = array<i64: 16, 1>}, {transform_indices = @transform_5, window_bounds = array<i64: 1, 16, 256>}]} {
    %c0 = arith.constant 0 : index
    %c0_0 = arith.constant 0 : index
    %c0_1 = arith.constant 0 : index
    %0 = vector.load %arg1[%c0, %c0_0, %c0_1] : memref<1x16x256xf32, #tpu.memory_space<vmem>>, vector<1x16x256xf32>
    %1 = vector.shape_cast %0 : vector<1x16x256xf32> to vector<16x256xf32>
    %cst = arith.constant dense<0.000000e+00> : vector<16xf32>
    %2 = vector.multi_reduction <add>, %1, %cst [1] : vector<16x256xf32> to vector<16xf32>
    %3 = vector.shape_cast %2 : vector<16xf32> to vector<16x1xf32>
    %cst_2 = arith.constant 3.906250e-03 : f32
    %4 = vector.broadcast %cst_2 : f32 to vector<16x1xf32>
    %5 = arith.mulf %3, %4 : vector<16x1xf32>
    %c0_3 = arith.constant 0 : index
    %c0_4 = arith.constant 0 : index
    %6 = vector.load %arg2[%c0_3, %c0_4] : memref<16x2xf32, #tpu.memory_space<vmem>>, vector<16x2xf32>
    %7 = vector.broadcast %5 : vector<16x1xf32> to vector<16x2xf32>
    %8 = arith.mulf %6, %7 : vector<16x2xf32>
    %cst_5 = arith.constant dense<0.000000e+00> : vector<2xf32>
    %9 = vector.multi_reduction <add>, %8, %cst_5 [0] : vector<16x2xf32> to vector<2xf32>
    %10 = vector.shape_cast %9 : vector<2xf32> to vector<1x2xf32>
    %c0_6 = arith.constant 0 : index
    %c0_7 = arith.constant 0 : index
    %11 = vector.load %arg3[%c0_6, %c0_7] : memref<1x2xf32, #tpu.memory_space<vmem>>, vector<1x2xf32>
    %12 = arith.addf %10, %11 : vector<1x2xf32>
    %cst_8 = arith.constant 0.000000e+00 : f32
    %13 = vector.broadcast %cst_8 : f32 to vector<1x2xf32>
    %14 = arith.maximumf %12, %13 : vector<1x2xf32>
    %c0_9 = arith.constant 0 : index
    %c0_10 = arith.constant 0 : index
    %15 = vector.load %arg4[%c0_9, %c0_10] : memref<16x2xf32, #tpu.memory_space<vmem>>, vector<16x2xf32>
    %16 = vector.broadcast %14 : vector<1x2xf32> to vector<16x2xf32>
    %17 = arith.mulf %15, %16 : vector<16x2xf32>
    %cst_11 = arith.constant dense<0.000000e+00> : vector<16xf32>
    %18 = vector.multi_reduction <add>, %17, %cst_11 [1] : vector<16x2xf32> to vector<16xf32>
    %19 = vector.shape_cast %18 : vector<16xf32> to vector<16x1xf32>
    %c0_12 = arith.constant 0 : index
    %c0_13 = arith.constant 0 : index
    %20 = vector.load %arg5[%c0_12, %c0_13] : memref<16x1xf32, #tpu.memory_space<vmem>>, vector<16x1xf32>
    %21 = arith.addf %19, %20 : vector<16x1xf32>
    %22 = arith.negf %21 : vector<16x1xf32>
    %23 = math.exp %22 : vector<16x1xf32>
    %cst_14 = arith.constant 1.000000e+00 : f32
    %24 = vector.broadcast %cst_14 : f32 to vector<16x1xf32>
    %25 = arith.addf %24, %23 : vector<16x1xf32>
    %26 = arith.divf %24, %25 : vector<16x1xf32>
    %27 = vector.broadcast %26 : vector<16x1xf32> to vector<16x256xf32>
    %28 = arith.mulf %1, %27 : vector<16x256xf32>
    %c0_15 = arith.constant 0 : index
    %c0_16 = arith.constant 0 : index
    %c0_17 = arith.constant 0 : index
    %29 = vector.load %arg6[%c0_15, %c0_16, %c0_17] : memref<1x16x256xf32, #tpu.memory_space<vmem>>, vector<1x16x256xf32>
    %30 = vector.shape_cast %29 : vector<1x16x256xf32> to vector<16x256xf32>
    %31 = vector.shape_cast %28 : vector<16x256xf32> to vector<1x16x256xf32>
    tpu.vector_store %arg6[%c0_15, %c0_16, %c0_17], %31 {strides = array<i32>} : memref<1x16x256xf32, #tpu.memory_space<vmem>>, vector<1x16x256xf32>,
    return
  }
  func.func @transform_0(%arg0: i32) -> (i32, i32, i32) {
    %c0_i32 = arith.constant 0 : i32
    %c0_i32_0 = arith.constant 0 : i32
    %c0_i32_1 = arith.constant 0 : i32
    return %arg0, %c0_i32, %c0_i32_0 : i32, i32, i32
  }
  func.func @transform_1(%arg0: i32) -> (i32, i32) {
    %c0_i32 = arith.constant 0 : i32
    %c0_i32_0 = arith.constant 0 : i32
    %c0_i32_1 = arith.constant 0 : i32
    return %c0_i32, %c0_i32_0 : i32, i32
  }
  func.func @transform_2(%arg0: i32) -> (i32, i32) {
    %c0_i32 = arith.constant 0 : i32
    %c0_i32_0 = arith.constant 0 : i32
    %c0_i32_1 = arith.constant 0 : i32
    return %c0_i32, %c0_i32_0 : i32, i32
  }
  func.func @transform_3(%arg0: i32) -> (i32, i32) {
    %c0_i32 = arith.constant 0 : i32
    %c0_i32_0 = arith.constant 0 : i32
    %c0_i32_1 = arith.constant 0 : i32
    return %c0_i32, %c0_i32_0 : i32, i32
  }
  func.func @transform_4(%arg0: i32) -> (i32, i32) {
    %c0_i32 = arith.constant 0 : i32
    %c0_i32_0 = arith.constant 0 : i32
    %c0_i32_1 = arith.constant 0 : i32
    return %c0_i32, %c0_i32_0 : i32, i32
  }
  func.func @transform_5(%arg0: i32) -> (i32, i32, i32) {
    %c0_i32 = arith.constant 0 : i32
    %c0_i32_0 = arith.constant 0 : i32
    %c0_i32_1 = arith.constant 0 : i32
    return %arg0, %c0_i32, %c0_i32_0 : i32, i32, i32
  }
}

</mosaic_0001>

<bundles_post_ra>
// kernel: tpu_custom_call.1
= control target key start
LH: loop header
LB: loop body
LE: loop exit
PB: predicated region body
PF: predicated region fallthrough
CT: control target
= control target key end

     0   :  { %10 = vsyncpa [#allocation3], 0  ;;  %s818_s0 = inlined_call_operand.hbm [shape: f32[2,16,256], index: 0, kind: input, shape index: {}]   ;;  %s819_s1 = inlined_call_operand.vmem [shape: f32[16,2], index: 1, kind: input, shape index: {}]   ;;  %s820_s2 = inlined_call_operand.vmem [shape: f32[1,2], index: 2, kind: input, shape index: {}]   ;;  %s821_s3 = inlined_call_operand.vmem [shape: f32[16,2], index: 3, kind: input, shape index: {}]   ;;  %s822_s4 = inlined_call_operand.vmem [shape: f32[16,1], index: 4, kind: input, shape index: {}]   ;;  %s823_s5 = inlined_call_operand.hbm [shape: f32[2,16,256], index: 5, kind: output, shape index: {}]  }
   0x1   :  { %12 = vsyncpa [#allocation3 + $0x1], 0 }
   0x2   :  { %13 = vsyncpa [#allocation4], 0 }
   0x3   :  { %15 = vsyncpa [#allocation4 + $0x1], 0  ;;  %s646_s18 = smov 0   ;;  %s648_s19 = smov 0  }
   0x4   :  { %s650_s20 = smov 0   ;;  %s652_s21 = smov 0  }
   0x5 LB: > { %s667_s22 = sadd.s32 4294967295, %s609_s21   ;;  %s434_s23 = sadd.s32 4294967294, %s609_s21   ;;  %s609_s21 = sphi %s652_s21, %s833_s21   ;;  %s605_s20 = sphi %s650_s20, %s832_s20   ;;  %s601_s19 = sphi %s648_s19, %s831_s19   ;;  %s597_s18 = sphi %s646_s18, %s830_s18  }
   0x6   : > { %s671_s24 = sadd.s32 1, %s609_s21   ;;  %s28_s25 = sadd.s32 1, %s605_s20 }
   0x7   : > { %s25_s26 = ssub.s32 %s609_s21, %s671_s24  ;;  %p35_p0 = scmp.ne.s32.totalorder %s605_s20, %s601_s19 }
   0x8   : > { %p26_p1 = scmp.eq.s32.totalorder %s25_s26, 0  ;;  %p36_p2 = scmp.eq.s32.totalorder %s609_s21, 0 }
   0x9   : > { %p41_p3 = scmp.ne.s32.totalorder %s601_s19, %s597_s18  ;;  %p42_p4 = scmp.eq.s32.totalorder %s667_s22, 0 }
   0xa   : > { %s683_s27 = scalar_select %p26_p1, %s605_s20, %s28_s25  }
   0xb   : > { %p685_p5 = por %p36_p2, %p35_p0  ;;  %p689_p6 = por %p42_p4, %p41_p3 }
   0xc   : > { %p149_p7 = scmp.eq.s32.totalorder %s667_s22, 1  ;;  %p155_p8 = scmp.eq.s32.totalorder %s434_s23, 1 }
   0xd   : > { %p464_p10 = scmp.lt.s32.totalorder %s609_s21, 2  ;;  %s187_s7 = sand.u32 1, %s605_s20  }
   0xe   : > { %p696_p11 = por %p149_p7, %p35_p0  ;;  %p700_p12 = por %p155_p8, %p41_p3 }
   0xf   : > { %s450_s8 = sshll.u32 %s609_s21, 5  ;;  %s437_s9 = sshll.u32 %s187_s7, 5 }
  0x10   : > { %s196_s12 = scalar_lea.hbm %s818_s0, %s450_s8  ;;  %s191_s14 = scalar_lea.vmem [#allocation2], %s437_s9 }
  0x11   : > { %s197_s13 = sshll.u32 %s196_s12, 4  ;;  %s199_s15 = sshll.u32 %s191_s14, 4  ;;  %s198_s13 = int_to_ptr.hbm [resolvable:$true] %s197_s13  ;;  %s200_s15 = int_to_ptr.vmem [resolvable:$true] %s199_s15 }
  0x12   : > { %p711_p13 = pnand %p464_p10, %p685_p5  ;;  %p440_p0 = scmp.ge.s32.totalorder %s609_s21, 1 }
  0x13   : > { %p207_p1 = scmp.lt.s32.totalorder %s609_s21, 3  ;;  %s188_s17 = scalar_lea.sflag [#allocation3], %s187_s7 }
  0x14   : > { %s513_s23 = sshra.s32 %s198_s13, 4  ;;  %p517_p3 = pneg %p711_p13  ;;  %s514_s23 = int_to_ptr.hbm [resolvable:$true] %s513_s23 }
  0x15   : > { %s515_s25 = scalar_lea.hbm %s514_s23, 32  ;;  %s520_s28 = scalar_lea.hbm %s818_s0, 64 }
  0x16   : > { %p516_p2 = scmp.ne.s32.totalorder %s514_s23, %s515_s25  ;;  %p521_p5 = scmp.lt.s32.totalorder %s514_s23, %s818_s0 }
  0x17   : > { %p522_p8 = scmp.lt.s32.totalorder %s520_s28, %s515_s25 }
  0x18   : > { %p518_p4 = pnand %p517_p3, %p516_p2 }
  0x19   : > { %p523_p10 = por %p522_p8, %p521_p5 }
  0x1a   : > { %p519_p7 = pneg %p518_p4 }
  0x1c   : > { %p524_p9 = pnand %p523_p10, %p519_p7 }
  0x1e   : > { %527 = shalt.err (!%p524_p9)
}
  0x1f   : > { %s611_s7 = smov 256   ;;  %s612_s11 = smov 16  }
  0x20   : > { %459 = dma.hbm_to_vmem [thread:$0]  (!%p711_p13), %s198_s13, 512, %s200_s15, %s188_s17, %s611_s7, %s611_s7, %s612_s11  }
  0x21   : > { %p208_p2 = pnand %p440_p0, %p207_p1 }
  0x22   : > { %s732_s12 = sand.u32 (!%p208_p2), 1, %s601_s19  }
  0x23   : > { %211 = sbr.rel (%p208_p2) target bundleno = 448 (0x1c0), region = 40  ;;  %s441_s14 = sshll.u32 (!%p208_p2), %s732_s12, 5 }
  0x24   : > { %s214_s23 = scalar_lea.sflag (!%p208_p2), [#allocation3], %s732_s12  ;;  %s217_s25 = scalar_lea.vmem (!%p208_p2), [#allocation2], %s441_s14 }
  0x28   : > { %588 = dma.done.wait (%p689_p6), %s214_s23, 512  }
  0x29   : > { %590 = vsyncadd (%p689_p6), %s214_s23, 4294966784  ;;  %v742_v0 = vld [vmem:[%s217_s25] sm:$0xff]  ;;  %v744_v1 = vld [vmem:[%s217_s25 + $0x8] sm:$0xff]  ;;  %vm261_vm0 = vcmask 15360   ;;  %v613_v33 = vmov 0   ;;  %s451_s29 = sshll.u32 %s667_s22, 5 }
  0x2a   : > { %v249_v2 = vadd.f32 %v744_v1, %v742_v0  ;;  %v748_v3 = vld [vmem:[%s217_s25 + $0x10] sm:$0xff]  ;;  %v750_v4 = vld [vmem:[%s217_s25 + $0x18] sm:$0xff]  ;;  %v257_v8 = vld [vmem:[%s819_s1] sm:$0xff]  ;;  %503 = vset.pattern.permute.xlu2 %v613_v33  ;;  %504 = vset.pattern.permute.xlu0 %v613_v33  ;;  %s244_s13 = scalar_lea.vmem [#allocation5], %s441_s14  ;;  %s357_s17 = scalar_lea.hbm %s823_s5, %s451_s29 }
  0x2b   : > { %v252_v5 = vadd.f32 %v750_v4, %v748_v3  ;;  %v258_v9 = vld [vmem:[%s819_s1 + $0x8] sm:$0xff]  ;;  %v271_v22 = vld [vmem:[%s820_s2] sm:$0x1]  ;;  %s358_s26 = sshll.u32 %s244_s13, 4  ;;  %s360_s8 = sshll.u32 %s357_s17, 4  ;;  %s359_s26 = int_to_ptr.vmem [resolvable:$true] %s358_s26  ;;  %s361_s8 = int_to_ptr.hbm [resolvable:$true] %s360_s8 }
  0x2c   : > { %250 = vadd.xlane.f32.xlu0 %v249_v2  ;;  %v274_v26 = vld [vmem:[%s821_s3] sm:$0xff]  ;;  %v275_v30 = vld [vmem:[%s821_s3 + $0x8] sm:$0xff]  ;;  %s346_s22 = scalar_lea.sflag [#allocation4], %s732_s12  ;;  %s557_s14 = sshra.s32 %s361_s8, 4  ;;  %s558_s14 = int_to_ptr.hbm [resolvable:$true] %s557_s14 }
  0x2d   : > { %v285_v34 = vld [vmem:[%s822_s4] sm:$0xff]  ;;  %v286_v38 = vld [vmem:[%s822_s4 + $0x8] sm:$0xff]  ;;  %s559_s28 = scalar_lea.hbm %s558_s14, 32  ;;  %s563_s7 = scalar_lea.hbm %s823_s5, 64 }
  0x2e   : > { %p560_p6 = scmp.ne.s32.totalorder %s558_s14, %s559_s28  ;;  %p564_p0 = scmp.lt.s32.totalorder %s558_s14, %s823_s5 }
  0x2f   : > { %p565_p1 = scmp.lt.s32.totalorder %s563_s7, %s559_s28 }
  0x30   : > { %p561_p9 = pnand %p560_p6, %p696_p11 }
  0x31   : > { %p566_p3 = por %p565_p1, %p564_p0 }
  0x32   : > { %p562_p13 = pneg %p561_p9 }
  0x34   : > { %253 = vadd.xlane.f32.xlu0 %v252_v5  ;;  %p567_p4 = pnand %p566_p3, %p562_p13 }
  0x9f   : > { %v251_v6 = vpop.xlane.xlu0 %250 }
  0xa0   : > { %v255_v7 = vmul.f32 0.00390625, %v251_v6 }
  0xa2   : > { %v259_v11 = vmul.f32 %v257_v8, %v255_v7 }
  0xa4   : > { %v262_v14 = vsel %vm261_vm0, %v259_v11, 0.0 }
  0xa7   : > { %v254_v10 = vpop.xlane.xlu0 %253 }
  0xa8   : > { %v256_v12 = vmul.f32 0.00390625, %v254_v10 }
  0xaa   : > { %v260_v13 = vmul.f32 %v258_v9, %v256_v12 }
  0xac   : > { %v263_v15 = vsel %vm261_vm0, %v260_v13, 0.0 }
  0xad   : > { %v264_v16 = vadd.f32 %v263_v15, %v262_v14 }
  0xaf   : > { %v265_v17 = vrot.slane %v264_v16, 4 }
  0xb1   : > { %v266_v18 = vadd.f32 %v265_v17, %v264_v16 }
  0xb3   : > { %v267_v19 = vrot.slane %v266_v18, 2 }
  0xb5   : > { %v268_v20 = vadd.f32 %v267_v19, %v266_v18 }
  0xb7   : > { %v269_v21 = vrot.slane %v268_v20, 1 }
  0xb9   : > { %v270_v23 = vadd.f32 %v269_v21, %v268_v20 }
  0xbb   : > { %v272_v24 = vadd.f32 %v271_v22, %v270_v23 }
  0xbd   : > { %v273_v25 = vmax.f32 %v272_v24, 0.0 }
  0xbf   : > { %v276_v27 = vperm.slane %v273_v25, 0 }
  0xc1   : > { %v277_v28 = vmul.f32 %v276_v27, %v274_v26  ;;  %v278_v31 = vmul.f32 %v276_v27, %v275_v30 }
  0xc3   : > { %v279_v29 = vsel %vm261_vm0, %v277_v28, 0.0  ;;  %v282_v32 = vsel %vm261_vm0, %v278_v31, 0.0 }
  0xc4   : > { %280 = vadd.xlane.f32.xlu1 %v279_v29 }
  0xcc   : > { %283 = vadd.xlane.f32.xlu1 %v282_v32 }
 0x137   : > { %v281_v35 = vpop.xlane.xlu1 %280 }
 0x138   : > { %v287_v36 = vadd.f32 %v285_v34, %v281_v35 }
 0x13a   : > { %v443_v37 = vmul.f32 -1.442695, %v287_v36 }
 0x13c   : > { %505 = vpow2.f32 %v443_v37 }
 0x13f   : > { %v284_v39 = vpop.xlane.xlu1 %283 }
 0x140   : > { %v288_v40 = vadd.f32 %v286_v38, %v284_v39 }
 0x142   : > { %v506_v41 = vpop.eup %505  ;;  %v444_v42 = vmul.f32 -1.442695, %v288_v40 }
 0x143   : > { %v295_v43 = vadd.f32 1.0, %v506_v41 }
 0x144   : > { %507 = vpow2.f32 %v444_v42 }
 0x145   : > { %509 = vrcp.f32 %v295_v43  ;;  %v308_v49 = vand.u32 2147483648, %v295_v43  ;;  %v306_v51 = vand.u32 2147483647, %v295_v43  ;;  %vm302_vm2 = vweird.f32 %v295_v43 }
 0x147   : > { %v309_v54 = vor.u32 1.1754944e-38, %v308_v49  ;;  %vm307_vm4 = vcmp.eq.f32.partialorder %v306_v51, 8.507059e+37 }
 0x14a   : > { %v508_v44 = vpop.eup %507 }
 0x14b   : > { %v510_v45 = vpop.eup %509  ;;  %v296_v46 = vadd.f32 1.0, %v508_v44 }
 0x14c   : > { %v298_v47 = vmul.f32 %v510_v45, %v295_v43  ;;  %vm303_vm1 = vweird.f32 %v510_v45 }
 0x14d   : > { %511 = vrcp.f32 %v296_v46  ;;  %vm304_vm3 = vmor %vm302_vm2, %vm303_vm1  ;;  %v323_v59 = vand.u32 2147483648, %v296_v46  ;;  %v321_v61 = vand.u32 2147483647, %v296_v46  ;;  %vm317_vm6 = vweird.f32 %v296_v46 }
 0x14e   : > { %v299_v48 = vsub.f32 1.0, %v298_v47 }
 0x14f   : > { %v324_v63 = vor.u32 1.1754944e-38, %v323_v59  ;;  %vm322_vm8 = vcmp.eq.f32.partialorder %v321_v61, 8.507059e+37 }
 0x150   : > { %v300_v50 = vmul.f32 %v510_v45, %v299_v48 }
 0x152   : > { %v301_v52 = vadd.f32 %v510_v45, %v300_v50 }
 0x153   : > { %v512_v53 = vpop.eup %511 }
 0x154   : > { %v305_v55 = vsel %vm304_vm3, %v510_v45, %v301_v52  ;;  %v313_v56 = vmul.f32 %v512_v53, %v296_v46  ;;  %vm318_vm5 = vweird.f32 %v512_v53 }
 0x155   : > { %v310_v57 = vsel %vm307_vm4, %v309_v54, %v305_v55  ;;  %vm319_vm7 = vmor %vm317_vm6, %vm318_vm5 }
 0x156   : > { %329 = vperm.xlu2 %503, %v310_v57   ;;  %v314_v58 = vsub.f32 1.0, %v313_v56 }
 0x158   : > { %v315_v60 = vmul.f32 %v512_v53, %v314_v58 }
 0x15a   : > { %v316_v62 = vadd.f32 %v512_v53, %v315_v60 }
 0x15c   : > { %v320_v2 = vsel %vm319_vm7, %v512_v53, %v316_v62 }
 0x15d   : > { %v325_v5 = vsel %vm322_vm8, %v324_v63, %v320_v2 }
 0x15e   : > { %334 = vperm.xlu2 %503, %v325_v5  }
 0x1b0   : > { %v330_v6 = vpop.permute.xlu2 %329 }
 0x1b1   : > { %v337_v7 = vmul.f32 %v330_v6, %v742_v0  ;;  %v338_v8 = vmul.f32 %v330_v6, %v744_v1 }
 0x1b3   : > { %341 = vst [vmem:[%s244_s13] sm:$0xff] %v337_v7 }
 0x1b4   : > { %342 = vst [vmem:[%s244_s13 + $0x8] sm:$0xff] %v338_v8 }
 0x1b8   : > { %v335_v9 = vpop.permute.xlu2 %334 }
 0x1b9   : > { %v339_v10 = vmul.f32 %v335_v9, %v748_v3  ;;  %v340_v11 = vmul.f32 %v335_v9, %v750_v4 }
 0x1bb   : > { %343 = vst [vmem:[%s244_s13 + $0x10] sm:$0xff] %v339_v10 }
 0x1bc   : > { %344 = vst [vmem:[%s244_s13 + $0x18] sm:$0xff] %v340_v11 }
 0x1bd   : > { %570 = shalt.err (!%p567_p4)
}
 0x1be   : > { %s614_s12 = smov 256   ;;  %s615_s25 = smov 16  }
 0x1bf   : > { %454 = dma.vmem_to_hbm [thread:$0]  (%p696_p11), %s359_s26, 512, %s361_s8, %s346_s22, %s614_s12, %s614_s12, %s615_s25  }
 0x1c0 PF: > { %s375_s29 = sand.u32 1, %s597_s18   ;;  %p829_p7 = scmp.ge.s32.totalorder %s609_s21, 2 }
 0x1c1   : > { %s376_s13 = scalar_lea.sflag [#allocation4], %s375_s29 }
 0x1c2   : > { %p461_p5 = pnand %p829_p7, %p700_p12 }
 0x1c4   : > { %p462_p8 = pneg %p461_p5 }
 0x1c6   : > { %592 = dma.done.wait (%p462_p8), %s376_s13, 512  }
 0x1c7   : > { %594 = vsyncadd (%p462_p8), %s376_s13, 4294966784  ;;  %p18_p10 = scmp.ge.s32.totalorder %s671_s24, 4   ;;  %s830_s18 = smov %s601_s19 }
 0x1c8   : > { %s831_s19 = smov %s605_s20  ;;  %s832_s20 = smov %s683_s27 }
 0x1c9   : > { %s833_s21 = smov %s671_s24  ;;  %20 = sbr.rel (!%p18_p10) target bundleno = 5 (0x5), region = 85 }
 0x1ce   :  { %382 = vsyncpa [#allocation3], 1 }
 0x1cf   :  { %384 = vsyncpa [#allocation3 + $0x1], 1 }
 0x1d0   :  { %385 = vsyncpa [#allocation4], 1 }
 0x1d1   :  { %387 = vsyncpa [#allocation4 + $0x1], 1 }

</bundles_post_ra>
